<compile_context>
chip_gen: v5e
topology: v5e:2x2
jax: 0.10.0
libtpu: 0.0.40
codegen_flags: <defaults>
</compile_context>

<pallas_src>
import functools

import jax
import jax.numpy as jnp
from jax.experimental import pallas as pl
from jax.experimental.pallas import tpu as pltpu


# ----------------------------------------------------------------------------- kernels

def _mse_acc_kernel(inv_n, x_ref, w_ref, y_ref, o_ref, acc_ref):
    """Accumulator variant (v5e/v6e): resident (8, D_out) accumulator, scalar finalize."""
    i = pl.program_id(0)

    @pl.when(i == 0)
    def _():
        acc_ref[...] = jnp.zeros_like(acc_ref)

    x = x_ref[...]
    if x.dtype != jnp.bfloat16:          # only if the producer did not already emit bf16
        x = x.astype(jnp.bfloat16)
    # MXU matmul: bf16 x bf16 -> f32 accumulation. W arrives already in bf16.
    pred = jnp.dot(x, w_ref[...], preferred_element_type=jnp.float32)
    diff = pred - y_ref[...]             # f32 on the VPU
    sq = diff * diff
    tb, d_out = sq.shape
    # Reduce the tile down to 8 sublane-dense rows: reshape regroups whole vreg tile-rows
    # (free view), the axis-0 sum is pure VPU adds — no XLU, no masked stores per step.
    acc_ref[...] += jnp.sum(sq.reshape(tb // 8, 8, d_out), axis=0)

    @pl.when(i == pl.num_programs(0) - 1)
    def _():
        total = jnp.sum(acc_ref[...], axis=1, keepdims=True)   # (8, 1)  lane reduce
        total = jnp.sum(total, axis=0, keepdims=True)          # (1, 1)  sublane reduce
        o_ref[...] = total * inv_n       # normalization folded in as a compile-time const


def _mse_partials_kernel(inv_n, x_ref, w_ref, y_ref, partial_ref):
    """Partials variant (v7x megacore): each grid step owns its (8, D_out) output block."""
    x = x_ref[...]
    if x.dtype != jnp.bfloat16:
        x = x.astype(jnp.bfloat16)
    pred = jnp.dot(x, w_ref[...], preferred_element_type=jnp.float32)
    diff = pred - y_ref[...]
    sq = diff * diff
    tb, d_out = sq.shape
    # Sublane-dense (8, D_out) block, lane-dense last dim => unmasked vst.
    partial_ref[...] = jnp.sum(sq.reshape(tb // 8, 8, d_out), axis=0) * inv_n


# ----------------------------------------------------------------------------- wrapper

_TILE_CANDIDATES = (8192, 4096, 2048, 1024, 512, 256, 128, 64, 32, 16)


def _default_variant():
    """'partials' (+parallel grid) only pays off on 2-TC chips (v7x); else 'accumulate'."""
    try:
        kind = jax.devices()[0].device_kind.lower()
    except Exception:  # pragma: no cover - defensive
        return "accumulate"
    return "partials" if "v7" in kind else "accumulate"


def _pick_batch_tile(B, row_bytes, w_bytes, budget_bytes=32 << 20, prefer_even_tiles=False):
    """Largest batch tile that divides B and keeps double-buffered x/y tiles + resident W
    under a VMEM budget that fits every generation (v7x: 64 MiB physical). Single-block
    runs are allowed (per-step overhead dominates small problems; no need to force 2 steps).
    On v7x, prefer an even tile count so the 'parallel' batch axis splits across both TCs."""
    cands = [t for t in _TILE_CANDIDATES if t <= B and B % t == 0]
    if not cands:
        return B  # block == full array dims is always legal
    fitting = [t for t in cands
               if 2 * t * row_bytes + 2 * w_bytes + (64 << 10) <= budget_bytes]
    if not fitting:
        fitting = [cands[-1]]
    if prefer_even_tiles:
        for t in fitting:
            n = B // t
            if n > 1 and n % 2 == 0:
                return t
    return fitting[0]


def mse_loss_pallas(x, w, y, variant="auto"):
    """Scalar MSE loss = mean((x @ w - y)^2); hot path in a tiled Pallas kernel."""
    B, D_in = x.shape
    D_in2, D_out = w.shape
    assert D_in == D_in2 and y.shape == (B, D_out)
    assert B % 8 == 0, "batch must be a multiple of 8 (sublane-dense partial reduce)"

    if variant == "auto":
        variant = _default_variant()

    # Cast W to bf16 once here: W is re-read on every grid step, so the one-off conversion
    # amortizes (NOT the wrapper-pre-scale anti-pattern, which concerns streamed inputs).
    w_bf16 = w if w.dtype == jnp.bfloat16 else w.astype(jnp.bfloat16)
    y = y if y.dtype == jnp.float32 else y.astype(jnp.float32)

    inv_n = 1.0 / float(B * D_out)
    row_bytes = D_in * jnp.dtype(x.dtype).itemsize + D_out * 4
    w_bytes = D_in * D_out * 2
    tb = _pick_batch_tile(B, row_bytes, w_bytes,
                          prefer_even_tiles=(variant == "partials"))
    num_tiles = B // tb

    in_specs = [
        # x: streamed batch tiles (double-buffered by the BlockSpec pipeline).
        pl.BlockSpec((tb, D_in), lambda i: (i, 0)),
        # W: constant block index -> VMEM-resident across all grid steps.
        pl.BlockSpec((D_in, D_out), lambda i: (0, 0)),
        # y: streamed batch tiles.
        pl.BlockSpec((tb, D_out), lambda i: (i, 0)),
    ]
    # TODO(synk): sweep pipeline_mode=pl.Buffered(3) on x/y (compute << DMA per step) and
    # pl.Buffered(1) on W (reclaims its redundant second buffer); measure, don't assume.

    if variant == "partials":
        partials = pl.pallas_call(
            functools.partial(_mse_partials_kernel, inv_n),
            out_shape=jax.ShapeDtypeStruct((num_tiles * 8, D_out), jnp.float32),
            grid_spec=pltpu.PrefetchScalarGridSpec(
                num_scalar_prefetch=0,
                grid=(num_tiles,),
                in_specs=in_specs,
                # Per-tile sublane-dense (8, D_out) block: no cross-step accumulator, so
                # the batch axis is safely "parallel" (v7x megacore shards it across TCs).
                out_specs=pl.BlockSpec((8, D_out), lambda i: (i, 0)),
            ),
            compiler_params=pltpu.CompilerParams(
                dimension_semantics=("parallel",),
                vmem_limit_bytes=48 << 20,
            ),
        )(x, w_bf16, y)
        # Tiny finalize over num_tiles*8*D_out partials (normalization already applied).
        return jnp.sum(partials)

    # "accumulate" variant (v5e/v6e single-TC default): the kernel itself emits the scalar,
    # no second XLA reduce op and no partials HBM round-trip.
    out = pl.pallas_call(
        functools.partial(_mse_acc_kernel, inv_n),
        out_shape=jax.ShapeDtypeStruct((1, 1), jnp.float32),
        grid_spec=pltpu.PrefetchScalarGridSpec(
            num_scalar_prefetch=0,
            grid=(num_tiles,),
            in_specs=in_specs,
            # Constant block index: output stays resident; written once at the last step.
            out_specs=pl.BlockSpec((1, 1), lambda i: (0, 0)),
            scratch_shapes=[pltpu.VMEM((8, D_out), jnp.float32)],
        ),
        compiler_params=pltpu.CompilerParams(
            dimension_semantics=("arbitrary",),   # reduction axis with a live accumulator
            vmem_limit_bytes=48 << 20,
        ),
    )(x, w_bf16, y)
    return out[0, 0]


# ----------------------------------------------------------------------------- LossBase port

class LossBaseJAX:
    """JAX port of LossBase: wraps a model + compute_loss, promotes 0-d metrics to (1,)."""

    def __init__(self, model_params, compute_loss, **kwargs):
        self.model = model_params
        self.compute_loss = compute_loss
        self.opts = kwargs

    def __call__(self, *batch, **kwargs):
        metrics = self.compute_loss(self.model, *batch, **dict(self.opts, **kwargs))
        out = {}
        for key, val in metrics.items():
            v = jnp.asarray(val)
            if v.ndim == 0:
                v = jnp.expand_dims(v, 0)  # torch.unsqueeze(metrics[key], 0)
            out[key] = v
        return out


def linear_mse_compute_loss(model_params, x, y, **kwargs):
    """Concrete compute_loss: linear model + MSE, hot path in Pallas."""
    loss = mse_loss_pallas(x, model_params["w"], y, variant=kwargs.get("variant", "auto"))
    return {"loss": loss}


# ----------------------------------------------------------------------------- main

if __name__ == "__main__":
    # MXU-aligned small shapes: batch=512 (tiled), d_in=d_out=128.
    B, D_IN, D_OUT = 512, 128, 128
    key = jax.random.PRNGKey(0)
    kx, ky, kw = jax.random.split(key, 3)

    # Upstream "producer" emits activations in bf16 (halves x's HBM bytes in this
    # bandwidth-bound kernel); targets stay f32; params are stored f32 torch-style.
    x = jax.random.normal(kx, (B, D_IN), dtype=jnp.bfloat16)
    y = jax.random.normal(ky, (B, D_OUT), dtype=jnp.float32)
    w = jax.random.normal(kw, (D_IN, D_OUT), dtype=jnp.float32) * 0.02

    loss_module = LossBaseJAX({"w": w}, linear_mse_compute_loss)
    metrics = loss_module(x, y)
    loss = jax.block_until_ready(metrics["loss"])
    assert loss.shape == (1,), loss.shape

    # Reference 1: same bf16-matmul precision as the kernel (tight tolerance).
    pred_bf16 = jnp.dot(x, w.astype(jnp.bfloat16), preferred_element_type=jnp.float32)
    ref_bf16 = jnp.mean((pred_bf16 - y) ** 2)
    assert jnp.allclose(loss[0], ref_bf16, rtol=1e-3, atol=1e-5), (loss, ref_bf16)

    # Reference 2: full f32 matmul (loose tolerance — bf16 MXU path is intentional).
    ref_f32 = jnp.mean((x.astype(jnp.float32) @ w - y) ** 2)
    assert jnp.allclose(loss[0], ref_f32, rtol=5e-2, atol=1e-3), (loss, ref_f32)

    # Exercise BOTH generation-specific variants explicitly ('accumulate' = v5e/v6e
    # default, 'partials' = v7x megacore default) so both code paths are checked here.
    for variant in ("accumulate", "partials"):
        lv = jax.block_until_ready(mse_loss_pallas(x, w, y, variant=variant))
        assert jnp.allclose(lv, ref_bf16, rtol=1e-3, atol=1e-5), (variant, lv, ref_bf16)

    print("KERNEL_OK")
</pallas_src>

<mosaic_0001>
module attributes {stable_mosaic.version = 11 : i64} {
  func.func @_mse_acc_kernel(%arg0: i32, %arg1: memref<512x128xbf16, #tpu.memory_space<vmem>>, %arg2: memref<128x128xbf16, #tpu.memory_space<vmem>>, %arg3: memref<512x128xf32, #tpu.memory_space<vmem>>, %arg4: memref<1x1xf32, #tpu.memory_space<vmem>>, %arg5: memref<8x128xf32, #tpu.memory_space<vmem>>) attributes {dimension_semantics = [#tpu.dimension_semantics<arbitrary>], iteration_bounds = array<i64: 1>, scalar_prefetch = 0 : i64, scratch_operands = 1 : i64, tpu.core_type = #tpu.core_type<tc>, window_params = [{transform_indices = @transform_0, window_bounds = array<i64: 512, 128>}, {pipeline_mode = #tpu.pipeline_mode<synchronous>, transform_indices = @transform_1, window_bounds = array<i64: 128, 128>}, {transform_indices = @transform_2, window_bounds = array<i64: 512, 128>}, {pipeline_mode = #tpu.pipeline_mode<synchronous>, transform_indices = @transform_3, window_bounds = array<i64: 1, 1>}]} {
    %c0_i32 = arith.constant 0 : i32
    %0 = arith.cmpi eq, %arg0, %c0_i32 : i32
    %1 = arith.extui %0 : i1 to i32
    %c0_i32_0 = arith.constant 0 : i32
    %2 = arith.cmpi ne, %1, %c0_i32_0 : i32
    scf.if %2 {
      %cst_13 = arith.constant 0.000000e+00 : f32
      %17 = vector.broadcast %cst_13 : f32 to vector<8x128xf32>
      %c0_14 = arith.constant 0 : index
      %c0_15 = arith.constant 0 : index
      %18 = vector.load %arg5[%c0_14, %c0_15] : memref<8x128xf32, #tpu.memory_space<vmem>>, vector<8x128xf32>
      tpu.vector_store %arg5[%c0_14, %c0_15], %17 {strides = array<i32>} : memref<8x128xf32, #tpu.memory_space<vmem>>, vector<8x128xf32>,
    } else {
    }
    %c0 = arith.constant 0 : index
    %c0_1 = arith.constant 0 : index
    %3 = vector.load %arg1[%c0, %c0_1] : memref<512x128xbf16, #tpu.memory_space<vmem>>, vector<512x128xbf16>
    %c0_2 = arith.constant 0 : index
    %c0_3 = arith.constant 0 : index
    %4 = vector.load %arg2[%c0_2, %c0_3] : memref<128x128xbf16, #tpu.memory_space<vmem>>, vector<128x128xbf16>
    %cst = arith.constant dense<0.000000e+00> : vector<512x128xf32>
    %5 = tpu.matmul %3, %4, %cst {dimension_numbers = #tpu.dot_dimension_numbers<[1], [0], [0], [1], [0, 0, 1, 1], [], []>} : vector<512x128xbf16>, vector<128x128xbf16>, vector<512x128xf32> -> vector<512x128xf32>
    %c0_4 = arith.constant 0 : index
    %c0_5 = arith.constant 0 : index
    %6 = vector.load %arg3[%c0_4, %c0_5] : memref<512x128xf32, #tpu.memory_space<vmem>>, vector<512x128xf32>
    %7 = arith.subf %5, %6 : vector<512x128xf32>
    %8 = arith.mulf %7, %7 : vector<512x128xf32>
    %c0_6 = arith.constant 0 : index
    %c0_7 = arith.constant 0 : index
    %9 = vector.load %arg5[%c0_6, %c0_7] : memref<8x128xf32, #tpu.memory_space<vmem>>, vector<8x128xf32>
    %10 = vector.shape_cast %8 : vector<512x128xf32> to vector<64x8x128xf32>
    %cst_8 = arith.constant dense<0.000000e+00> : vector<8x128xf32>
    %11 = vector.multi_reduction <add>, %10, %cst_8 [0] : vector<64x8x128xf32> to vector<8x128xf32>
    %12 = arith.addf %9, %11 : vector<8x128xf32>
    %c0_9 = arith.constant 0 : index
    %c0_10 = arith.constant 0 : index
    %13 = vector.load %arg5[%c0_9, %c0_10] : memref<8x128xf32, #tpu.memory_space<vmem>>, vector<8x128xf32>
    tpu.vector_store %arg5[%c0_9, %c0_10], %12 {strides = array<i32>} : memref<8x128xf32, #tpu.memory_space<vmem>>, vector<8x128xf32>,
    %c0_i32_11 = arith.constant 0 : i32
    %14 = arith.cmpi eq, %arg0, %c0_i32_11 : i32
    %15 = arith.extui %14 : i1 to i32
    %c0_i32_12 = arith.constant 0 : i32
    %16 = arith.cmpi ne, %15, %c0_i32_12 : i32
    scf.if %16 {
      %c0_13 = arith.constant 0 : index
      %c0_14 = arith.constant 0 : index
      %17 = vector.load %arg5[%c0_13, %c0_14] : memref<8x128xf32, #tpu.memory_space<vmem>>, vector<8x128xf32>
      %cst_15 = arith.constant dense<0.000000e+00> : vector<8xf32>
      %18 = vector.multi_reduction <add>, %17, %cst_15 [1] : vector<8x128xf32> to vector<8xf32>
      %19 = vector.shape_cast %18 : vector<8xf32> to vector<8x1xf32>
      %cst_16 = arith.constant dense<0.000000e+00> : vector<1xf32>
      %20 = vector.multi_reduction <add>, %19, %cst_16 [0] : vector<8x1xf32> to vector<1xf32>
      %21 = vector.shape_cast %20 : vector<1xf32> to vector<1x1xf32>
      %cst_17 = arith.constant 1.52587891E-5 : f32
      %22 = vector.broadcast %cst_17 : f32 to vector<1x1xf32>
      %23 = arith.mulf %21, %22 : vector<1x1xf32>
      %c0_18 = arith.constant 0 : index
      %c0_19 = arith.constant 0 : index
      %24 = vector.load %arg4[%c0_18, %c0_19] : memref<1x1xf32, #tpu.memory_space<vmem>>, vector<1x1xf32>
      tpu.vector_store %arg4[%c0_18, %c0_19], %23 {strides = array<i32>} : memref<1x1xf32, #tpu.memory_space<vmem>>, vector<1x1xf32>,
    } else {
    }
    return
  }
  func.func @transform_0(%arg0: i32) -> (i32, i32) {
    %c0_i32 = arith.constant 0 : i32
    %c0_i32_0 = arith.constant 0 : i32
    return %arg0, %c0_i32 : i32, i32
  }
  func.func @transform_1(%arg0: i32) -> (i32, i32) {
    %c0_i32 = arith.constant 0 : i32
    %c0_i32_0 = arith.constant 0 : i32
    %c0_i32_1 = arith.constant 0 : i32
    return %c0_i32, %c0_i32_0 : i32, i32
  }
  func.func @transform_2(%arg0: i32) -> (i32, i32) {
    %c0_i32 = arith.constant 0 : i32
    %c0_i32_0 = arith.constant 0 : i32
    return %arg0, %c0_i32 : i32, i32
  }
  func.func @transform_3(%arg0: i32) -> (i32, i32) {
    %c0_i32 = arith.constant 0 : i32
    %c0_i32_0 = arith.constant 0 : i32
    %c0_i32_1 = arith.constant 0 : i32
    return %c0_i32, %c0_i32_0 : i32, i32
  }
}

</mosaic_0001>

<bundles_post_ra>
// kernel: tpu_custom_call.1
= control target key start
LH: loop header
LB: loop body
LE: loop exit
PB: predicated region body
PF: predicated region fallthrough
CT: control target
= control target key end

     0   :  { %8 = vsyncpa [#allocation4], 0  ;;  %s1329_s0 = inlined_call_operand.hbm [shape: bf16[512,128], index: 0, kind: input, shape index: {}]   ;;  %s1330_s1 = inlined_call_operand.hbm [shape: bf16[128,128], index: 1, kind: input, shape index: {}]   ;;  %s1331_s2 = inlined_call_operand.hbm [shape: f32[512,128], index: 2, kind: input, shape index: {}]   ;;  %s1332_s3 = inlined_call_operand.hbm [shape: f32[1,1], index: 3, kind: output, shape index: {}]  }
   0x1   :  { %9 = vsyncpa [#allocation7], 0 }
   0x2   :  { %10 = vsyncpa [#allocation5], 0  ;;  %s28_s14 = sshll.u32 %s1330_s1, 4  ;;  %s1181_s15 = smov [#allocation6]   ;;  %s29_s14 = int_to_ptr.hbm [resolvable:$true] %s28_s14 }
   0x3   :  { %s30_s16 = sshll.u32 %s1181_s15, 4  ;;  %s15_s19 = sshll.u32 %s1329_s0, 4  ;;  %s31_s16 = int_to_ptr.vmem [resolvable:$true] %s30_s16  ;;  %s16_s19 = int_to_ptr.hbm [resolvable:$true] %s15_s19 }
   0x4   :  { %s1182_s20 = smov 64   ;;  %s1183_s21 = smov 4  }
   0x5   :  { %36 = dma.hbm_to_vmem [thread:$0]  %s29_s14, 1024, %s31_s16, [#allocation7], %s1182_s20, %s1182_s20, %s1183_s21  }
   0x6   :  { %s1184_s22 = smov [#allocation3]   ;;  %s41_s26 = sshll.u32 %s1331_s2, 4  ;;  %s42_s26 = int_to_ptr.hbm [resolvable:$true] %s41_s26 }
   0x7   :  { %s17_s23 = sshll.u32 %s1184_s22, 4  ;;  %s1185_s1 = smov [#allocation8]   ;;  %s18_s23 = int_to_ptr.vmem [resolvable:$true] %s17_s23 }
   0x8   :  { %23 = dma.hbm_to_vmem [thread:$0]  %s16_s19, 4096, %s18_s23, [#allocation4], %s1182_s20, %s1182_s20, %s1183_s21  }
   0x9   :  { %s43_s27 = sshll.u32 %s1185_s1, 4  ;;  %s1186_s28 = smov 128   ;;  %s44_s27 = int_to_ptr.vmem [resolvable:$true] %s43_s27 }
   0xa   :  { %s1187_s29 = smov 8  }
   0xb   :  { %49 = dma.hbm_to_vmem [thread:$0]  %s42_s26, 8192, %s44_s27, [#allocation7], %s1186_s28, %s1186_s28, %s1187_s29  }
   0xc   :  { %1175 = dma.done.wait [#allocation4], 4096  }
   0xd   :  { %1176 = vsyncadd [#allocation4], 4294963200 }
   0xe   :  { %1177 = dma.done.wait [#allocation7], 9216  }
   0xf   :  { %1178 = vsyncadd [#allocation7], 4294958080  ;;  %v1046_v0 = vld [vmem:[#allocation6 + $0x38] sm:$0xff]  ;;  %v1045_v1 = vld [vmem:[#allocation6 + $0x30] sm:$0xff]  ;;  %s1188_s0 = smov [#allocation9]   ;;  %s836_s5 = sshll.u32 %s1332_s3, 4  ;;  %s837_s5 = int_to_ptr.hbm [resolvable:$true] %s836_s5 }
  0x10   :  { %387 = vmatpush.bf16.msra.mxu0 %v1046_v0  ;;  %1047 = vmatpush.bf16.msra.mxu1 %v1046_v0  ;;  %v1044_v2 = vld [vmem:[#allocation6 + $0x28] sm:$0xff]  ;;  %v1043_v3 = vld [vmem:[#allocation6 + $0x20] sm:$0xff]  ;;  %v1042_v4 = vld [vmem:[#allocation6 + $0x18] sm:$0xff]  ;;  %s834_s2 = sshll.u32 %s1188_s0, 4  ;;  %vm827_vm0 = vcmask 0   ;;  %s835_s2 = int_to_ptr.vmem [resolvable:$true] %s834_s2 }
  0x11   :  { %1048 = vmatpush.bf16.msra.mxu2 %v1046_v0  ;;  %1049 = vmatpush.bf16.msra.mxu3 %v1046_v0  ;;  %v1041_v5 = vld [vmem:[#allocation6 + $0x10] sm:$0xff]  ;;  %v1040_v6 = vld [vmem:[#allocation6 + $0x8] sm:$0xff]  ;;  %v1039_v7 = vld [vmem:[#allocation6] sm:$0xff] }
  0x12   :  { %v1007_v8 = vld [vmem:[#allocation3] sm:$0xff]  ;;  %v1008_v10 = vld [vmem:[#allocation3 + $0x8] sm:$0xff]  ;;  %v1009_v13 = vld [vmem:[#allocation3 + $0x10] sm:$0xff] }
  0x13   :  { %v1015_v9 = vld [vmem:[#allocation3 + $0x40] sm:$0xff]  ;;  %v1016_v11 = vld [vmem:[#allocation3 + $0x48] sm:$0xff]  ;;  %v1017_v14 = vld [vmem:[#allocation3 + $0x50] sm:$0xff] }
  0x14   :  { %388 = vmatpush.bf16.msra.mxu0 %v1045_v1  ;;  %1050 = vmatpush.bf16.msra.mxu1 %v1045_v1  ;;  %v1023_v12 = vld [vmem:[#allocation3 + $0x80] sm:$0xff]  ;;  %v1024_v15 = vld [vmem:[#allocation3 + $0x88] sm:$0xff]  ;;  %v1010_v16 = vld [vmem:[#allocation3 + $0x18] sm:$0xff] }
  0x15   :  { %1051 = vmatpush.bf16.msra.mxu2 %v1045_v1  ;;  %1052 = vmatpush.bf16.msra.mxu3 %v1045_v1  ;;  %v1018_v17 = vld [vmem:[#allocation3 + $0x58] sm:$0xff]  ;;  %v1025_v18 = vld [vmem:[#allocation3 + $0x90] sm:$0xff]  ;;  %v1031_v19 = vld [vmem:[#allocation3 + $0xc0] sm:$0xff] }
  0x16   :  { %v1011_v20 = vld [vmem:[#allocation3 + $0x20] sm:$0xff]  ;;  %v1026_v22 = vld [vmem:[#allocation3 + $0x98] sm:$0xff]  ;;  %v1032_v23 = vld [vmem:[#allocation3 + $0xc8] sm:$0xff] }
  0x17   :  { %v1019_v21 = vld [vmem:[#allocation3 + $0x60] sm:$0xff]  ;;  %v1012_v24 = vld [vmem:[#allocation3 + $0x28] sm:$0xff]  ;;  %v1033_v27 = vld [vmem:[#allocation3 + $0xd0] sm:$0xff] }
  0x18   :  { %389 = vmatpush.bf16.msra.mxu0 %v1044_v2  ;;  %1053 = vmatpush.bf16.msra.mxu1 %v1044_v2  ;;  %v1020_v25 = vld [vmem:[#allocation3 + $0x68] sm:$0xff]  ;;  %v1027_v26 = vld [vmem:[#allocation3 + $0xa0] sm:$0xff]  ;;  %v1013_v28 = vld [vmem:[#allocation3 + $0x30] sm:$0xff] }
  0x19   :  { %1054 = vmatpush.bf16.msra.mxu2 %v1044_v2  ;;  %1055 = vmatpush.bf16.msra.mxu3 %v1044_v2  ;;  %v1021_v29 = vld [vmem:[#allocation3 + $0x70] sm:$0xff]  ;;  %v1028_v30 = vld [vmem:[#allocation3 + $0xa8] sm:$0xff]  ;;  %v1034_v31 = vld [vmem:[#allocation3 + $0xd8] sm:$0xff] }
  0x1a   :  { %v1014_v32 = vld [vmem:[#allocation3 + $0x38] sm:$0xff]  ;;  %v1029_v34 = vld [vmem:[#allocation3 + $0xb0] sm:$0xff]  ;;  %v1035_v35 = vld [vmem:[#allocation3 + $0xe0] sm:$0xff] }
  0x1b   :  { %v1022_v33 = vld [vmem:[#allocation3 + $0x78] sm:$0xff]  ;;  %v1036_v39 = vld [vmem:[#allocation3 + $0xe8] sm:$0xff]  ;;  %v556_v40 = vld [vmem:[#allocation8] sm:$0xff] }
  0x1c   :  { %390 = vmatpush.bf16.msra.mxu0 %v1043_v3  ;;  %1056 = vmatpush.bf16.msra.mxu1 %v1043_v3  ;;  %v1030_v38 = vld [vmem:[#allocation3 + $0xb8] sm:$0xff]  ;;  %v557_v41 = vld [vmem:[#allocation8 + $0x8] sm:$0xff]  ;;  %v558_v49 = vld [vmem:[#allocation8 + $0x10] sm:$0xff] }
  0x1d   :  { %1057 = vmatpush.bf16.msra.mxu2 %v1043_v3  ;;  %1058 = vmatpush.bf16.msra.mxu3 %v1043_v3  ;;  %v1037_v54 = vld [vmem:[#allocation3 + $0xf0] sm:$0xff]  ;;  %v559_v56 = vld [vmem:[#allocation8 + $0x18] sm:$0xff]  ;;  %v560_v62 = vld [vmem:[#allocation8 + $0x20] sm:$0xff] }
  0x1e   :  { %v1038_v3 = vld [vmem:[#allocation3 + $0xf8] sm:$0xff] }
  0x20   :  { %391 = vmatpush.bf16.msra.mxu0 %v1042_v4  ;;  %1059 = vmatpush.bf16.msra.mxu1 %v1042_v4 }
  0x21   :  { %1060 = vmatpush.bf16.msra.mxu2 %v1042_v4  ;;  %1061 = vmatpush.bf16.msra.mxu3 %v1042_v4 }
  0x24   :  { %392 = vmatpush.bf16.msra.mxu0 %v1041_v5  ;;  %1062 = vmatpush.bf16.msra.mxu1 %v1041_v5 }
  0x25   :  { %1063 = vmatpush.bf16.msra.mxu2 %v1041_v5  ;;  %1064 = vmatpush.bf16.msra.mxu3 %v1041_v5 }
  0x28   :  { %393 = vmatpush.bf16.msra.mxu0 %v1040_v6  ;;  %1065 = vmatpush.bf16.msra.mxu1 %v1040_v6 }
  0x29   :  { %1066 = vmatpush.bf16.msra.mxu2 %v1040_v6  ;;  %1067 = vmatpush.bf16.msra.mxu3 %v1040_v6 }
  0x2c   :  { %394 = vmatpush.bf16.msra.mxu0 %v1039_v7  ;;  %1068 = vmatpush.bf16.msra.mxu1 %v1039_v7 }
  0x2d   :  { %1069 = vmatpush.bf16.msra.mxu2 %v1039_v7  ;;  %1070 = vmatpush.bf16.msra.mxu3 %v1039_v7 }
  0x2f   :  { %395 = vmatmul.bf16.vlgmr.msra.gmra.mxu0 %v1007_v8  ;;  %435 = vmatmul.bf16.vlgmr.msra.gmra.mxu1 %v1015_v9 }
  0x30   :  { %475 = vmatmul.bf16.vlgmr.msra.gmra.mxu2 %v1023_v12  ;;  %515 = vmatmul.bf16.vlgmr.msra.gmra.mxu3 %v1031_v19 }
  0x3f   :  { %400 = vmatmul.bf16.gmra.mxu0 %v1008_v10  ;;  %440 = vmatmul.bf16.gmra.mxu1 %v1016_v11 }
  0x40   :  { %480 = vmatmul.bf16.gmra.mxu2 %v1024_v15  ;;  %520 = vmatmul.bf16.gmra.mxu3 %v1032_v23 }
  0x4f   :  { %405 = vmatmul.bf16.gmra.mxu0 %v1009_v13  ;;  %445 = vmatmul.bf16.gmra.mxu1 %v1017_v14 }
  0x50   :  { %485 = vmatmul.bf16.gmra.mxu2 %v1025_v18  ;;  %525 = vmatmul.bf16.gmra.mxu3 %v1033_v27 }
  0x5f   :  { %410 = vmatmul.bf16.gmra.mxu0 %v1010_v16  ;;  %450 = vmatmul.bf16.gmra.mxu1 %v1018_v17 }
  0x60   :  { %490 = vmatmul.bf16.gmra.mxu2 %v1026_v22  ;;  %530 = vmatmul.bf16.gmra.mxu3 %v1034_v31 }
  0x6f   :  { %415 = vmatmul.bf16.gmra.mxu0 %v1011_v20  ;;  %455 = vmatmul.bf16.gmra.mxu1 %v1019_v21 }
  0x70   :  { %495 = vmatmul.bf16.gmra.mxu2 %v1027_v26  ;;  %535 = vmatmul.bf16.gmra.mxu3 %v1035_v35  ;;  %v564_v35 = vld [vmem:[#allocation8 + $0x40] sm:$0xff] }
  0x7f   :  { %420 = vmatmul.bf16.gmra.mxu0 %v1012_v24  ;;  %460 = vmatmul.bf16.gmra.mxu1 %v1020_v25 }
  0x80   :  { %500 = vmatmul.bf16.gmra.mxu2 %v1028_v30  ;;  %540 = vmatmul.bf16.gmra.mxu3 %v1036_v39 }
  0x8f   :  { %425 = vmatmul.bf16.gmra.mxu0 %v1013_v28  ;;  %465 = vmatmul.bf16.gmra.mxu1 %v1021_v29  ;;  %v561_v28 = vld [vmem:[#allocation8 + $0x28] sm:$0xff]  ;;  %v562_v29 = vld [vmem:[#allocation8 + $0x30] sm:$0xff] }
  0x90   :  { %505 = vmatmul.bf16.gmra.mxu2 %v1029_v34  ;;  %545 = vmatmul.bf16.gmra.mxu3 %v1037_v54 }
  0x9f   :  { %430 = vmatmul.bf16.gmra.mxu0 %v1014_v32  ;;  %470 = vmatmul.bf16.gmra.mxu1 %v1022_v33  ;;  %v563_v32 = vld [vmem:[#allocation8 + $0x38] sm:$0xff] }
  0xa0   :  { %510 = vmatmul.bf16.gmra.mxu2 %v1030_v38  ;;  %550 = vmatmul.bf16.gmra.mxu3 %v1038_v3 }
  0xac   :  { %v396_v36 = vpop.f32.mrf.mxu0  ;;  %v1218_v37 = vpop.f32.mrf.mxu1 }
  0xad   :  { %v620_v42 = vsub.f32 %v396_v36, %v556_v40  ;;  %v565_v40 = vld [vmem:[#allocation8 + $0x48] sm:$0xff] }
  0xaf   :  { %v684_v46 = vmul.f32 %v620_v42, %v620_v42 }
  0xb3   :  { %v1226_v63 = vpop.f32.mrf.mxu2  ;;  %v1240_v14 = vpop.f32.mrf.mxu3 }
  0xb4   :  { %v398_v43 = vpop.f32.mrf.mxu0  ;;  %v1220_v44 = vpop.f32.mrf.mxu1 }
  0xb5   :  { %v621_v45 = vsub.f32 %v398_v43, %v557_v41 }
  0xb7   :  { %v685_v47 = vmul.f32 %v621_v45, %v621_v45  ;;  %v566_v45 = vld [vmem:[#allocation8 + $0x50] sm:$0xff] }
  0xb9   :  { %v749_v48 = vadd.f32 %v685_v47, %v684_v46 }
  0xbb   :  { %v1230_v7 = vpop.f32.mrf.mxu2  ;;  %v1246_v19 = vpop.f32.mrf.mxu3 }
  0xbc   :  { %v401_v50 = vpop.f32.mrf.mxu0  ;;  %v1222_v52 = vpop.f32.mrf.mxu1 }
  0xbd   :  { %v622_v51 = vsub.f32 %v401_v50, %v558_v49  ;;  %v567_v50 = vld [vmem:[#allocation8 + $0x58] sm:$0xff] }
  0xbf   :  { %v686_v53 = vmul.f32 %v622_v51, %v622_v51 }
  0xc1   :  { %v750_v55 = vadd.f32 %v749_v48, %v686_v53 }
  0xc3   :  { %v1234_v10 = vpop.f32.mrf.mxu2  ;;  %v1252_v23 = vpop.f32.mrf.mxu3 }
  0xc4   :  { %v403_v57 = vpop.f32.mrf.mxu0  ;;  %v1224_v60 = vpop.f32.mrf.mxu1 }
  0xc5   :  { %v623_v58 = vsub.f32 %v403_v57, %v559_v56 }
  0xc7   :  { %v687_v59 = vmul.f32 %v623_v58, %v623_v58 }
  0xc9   :  { %v751_v61 = vadd.f32 %v750_v55, %v687_v59  ;;  %v568_v55 = vld [vmem:[#allocation8 + $0x60] sm:$0xff] }
  0xcb   :  { %v1238_v13 = vpop.f32.mrf.mxu2  ;;  %v1258_v27 = vpop.f32.mrf.mxu3 }
  0xcc   :  { %v406_v0 = vpop.f32.mrf.mxu0  ;;  %v1228_v5 = vpop.f32.mrf.mxu1 }
  0xcd   :  { %v624_v1 = vsub.f32 %v406_v0, %v560_v62 }
  0xcf   :  { %v688_v2 = vmul.f32 %v624_v1, %v624_v1 }
  0xd1   :  { %v752_v4 = vadd.f32 %v751_v61, %v688_v2  ;;  %v569_v61 = vld [vmem:[#allocation8 + $0x68] sm:$0xff] }
  0xd3   :  { %v1244_v17 = vpop.f32.mrf.mxu2  ;;  %v1264_v41 = vpop.f32.mrf.mxu3 }
  0xd4   :  { %v408_v6 = vpop.f32.mrf.mxu0  ;;  %v1232_v9 = vpop.f32.mrf.mxu1 }
  0xd5   :  { %v625_v31 = vsub.f32 %v408_v6, %v561_v28 }
  0xd7   :  { %v689_v38 = vmul.f32 %v625_v31, %v625_v31 }
  0xd9   :  { %v753_v47 = vadd.f32 %v752_v4, %v689_v38  ;;  %v570_v4 = vld [vmem:[#allocation8 + $0x70] sm:$0xff] }
  0xdb   :  { %v1250_v22 = vpop.f32.mrf.mxu2  ;;  %v1270_v6 = vpop.f32.mrf.mxu3 }
  0xdc   :  { %v411_v8 = vpop.f32.mrf.mxu0  ;;  %v1236_v12 = vpop.f32.mrf.mxu1 }
  0xdd   :  { %v626_v34 = vsub.f32 %v411_v8, %v562_v29 }
  0xdf   :  { %v690_v42 = vmul.f32 %v626_v34, %v626_v34 }
  0xe1   :  { %v754_v51 = vadd.f32 %v753_v47, %v690_v42  ;;  %v574_v47 = vld [vmem:[#allocation8 + $0x90] sm:$0xff] }
  0xe3   :  { %v1256_v26 = vpop.f32.mrf.mxu2 }
  0xe4   :  { %v413_v11 = vpop.f32.mrf.mxu0  ;;  %v1242_v16 = vpop.f32.mrf.mxu1 }
  0xe5   :  { %v627_v39 = vsub.f32 %v413_v11, %v563_v32  ;;  %v572_v32 = vld [vmem:[#allocation8 + $0x80] sm:$0xff] }
  0xe6   :  { %v636_v42 = vsub.f32 %v1218_v37, %v572_v32  ;;  %v577_v37 = vld [vmem:[#allocation8 + $0xa8] sm:$0xff] }
  0xe7   :  { %v691_v48 = vmul.f32 %v627_v39, %v627_v39  ;;  %v573_v39 = vld [vmem:[#allocation8 + $0x88] sm:$0xff] }
  0xe9   :  { %v755_v57 = vadd.f32 %v754_v51, %v691_v48  ;;  %v637_v48 = vsub.f32 %v1220_v44, %v573_v39  ;;  %v575_v51 = vld [vmem:[#allocation8 + $0x98] sm:$0xff] }
  0xeb   :  { %v1262_v36 = vpop.f32.mrf.mxu2 }
  0xec   :  { %v416_v15 = vpop.f32.mrf.mxu0  ;;  %v1248_v20 = vpop.f32.mrf.mxu1 }
  0xed   :  { %v628_v43 = vsub.f32 %v416_v15, %v564_v35 }
  0xef   :  { %v692_v53 = vmul.f32 %v628_v43, %v628_v43 }
  0xf1   :  { %v756_v0 = vadd.f32 %v755_v57, %v692_v53  ;;  %v700_v53 = vmul.f32 %v636_v42, %v636_v42  ;;  %v576_v57 = vld [vmem:[#allocation8 + $0xa0] sm:$0xff] }
  0xf3   :  { %v1268_v62 = vpop.f32.mrf.mxu2 }
  0xf4   :  { %v418_v18 = vpop.f32.mrf.mxu0  ;;  %v1254_v25 = vpop.f32.mrf.mxu1 }
  0xf5   :  { %v629_v49 = vsub.f32 %v418_v18, %v565_v40 }
  0xf7   :  { %v693_v58 = vmul.f32 %v629_v49, %v629_v49 }
  0xf9   :  { %v757_v8 = vadd.f32 %v756_v0, %v693_v58  ;;  %v701_v58 = vmul.f32 %v637_v48, %v637_v48 }
  0xfc   :  { %v421_v21 = vpop.f32.mrf.mxu0  ;;  %v1260_v33 = vpop.f32.mrf.mxu1 }
  0xfd   :  { %v630_v54 = vsub.f32 %v421_v21, %v566_v45 }
  0xff   :  { %v694_v1 = vmul.f32 %v630_v54, %v630_v54  ;;  %v638_v54 = vsub.f32 %v1222_v52, %v574_v47  ;;  %v579_v52 = vld [vmem:[#allocation8 + $0xb8] sm:$0xff] }
 0x100   :  { %v643_v32 = vsub.f32 %v1242_v16, %v579_v52  ;;  %v583_v47 = vld [vmem:[#allocation8 + $0xd8] sm:$0xff]  ;;  %v584_v16 = vld [vmem:[#allocation8 + $0xe0] sm:$0xff] }
 0x101   :  { %v758_v18 = vadd.f32 %v757_v8, %v694_v1  ;;  %v702_v1 = vmul.f32 %v638_v54, %v638_v54 }
 0x102   :  { %v707_v42 = vmul.f32 %v643_v32, %v643_v32  ;;  %v590_v32 = vld [vmem:[#allocation8 + $0x110] sm:$0xff] }
 0x104   :  { %v423_v24 = vpop.f32.mrf.mxu0  ;;  %v1266_v56 = vpop.f32.mrf.mxu1 }
 0x105   :  { %v631_v59 = vsub.f32 %v423_v24, %v567_v50  ;;  %v571_v24 = vld [vmem:[#allocation8 + $0x78] sm:$0xff] }
 0x107   :  { %v695_v11 = vmul.f32 %v631_v59, %v631_v59  ;;  %v639_v59 = vsub.f32 %v1224_v60, %v575_v51 }
 0x109   :  { %v759_v29 = vadd.f32 %v758_v18, %v695_v11  ;;  %v703_v8 = vmul.f32 %v639_v59, %v639_v59  ;;  %v641_v11 = vsub.f32 %v1232_v9, %v577_v37 }
 0x10c   :  { %v426_v30 = vpop.f32.mrf.mxu0  ;;  %v466_v34 = vpop.f32.mrf.mxu1 }
 0x10d   :  { %v632_v2 = vsub.f32 %v426_v30, %v568_v55  ;;  %v1272_v30 = vpop.f32.mrf.mxu2 }
 0x10f   :  { %v696_v21 = vmul.f32 %v632_v2, %v632_v2  ;;  %v640_v2 = vsub.f32 %v1228_v5, %v576_v57 }
 0x111   :  { %v760_v35 = vadd.f32 %v759_v29, %v696_v21  ;;  %v704_v21 = vmul.f32 %v640_v2, %v640_v2  ;;  %v580_v29 = vld [vmem:[#allocation8 + $0xc0] sm:$0xff] }
 0x114   :  { %v428_v46 = vpop.f32.mrf.mxu0  ;;  %v468_v0 = vpop.f32.mrf.mxu1 }
 0x115   :  { %v633_v15 = vsub.f32 %v428_v46, %v569_v61  ;;  %v1275_v46 = vpop.f32.mrf.mxu3  ;;  %v1281_v44 = vpop.f32.mrf.mxu2 }
 0x117   :  { %v697_v31 = vmul.f32 %v633_v15, %v633_v15 }
 0x119   :  { %v761_v43 = vadd.f32 %v760_v35, %v697_v31  ;;  %v705_v31 = vmul.f32 %v641_v11, %v641_v11  ;;  %v588_v11 = vld [vmem:[#allocation8 + $0x100] sm:$0xff] }
 0x11c   :  { %v431_v3 = vpop.f32.mrf.mxu0  ;;  %v471_v9 = vpop.f32.mrf.mxu1 }
 0x11d   :  { %v634_v28 = vsub.f32 %v431_v3, %v570_v4  ;;  %v578_v4 = vld [vmem:[#allocation8 + $0xb0] sm:$0xff]  ;;  %v1284_v18 = vpop.f32.mrf.mxu3  ;;  %v1290_v48 = vpop.f32.mrf.mxu2 }
 0x11e   :  { %v642_v60 = vsub.f32 %v1236_v12, %v578_v4 }
 0x11f   :  { %v698_v38 = vmul.f32 %v634_v28, %v634_v28 }
 0x120   :  { %v706_v35 = vmul.f32 %v642_v60, %v642_v60 }
 0x121   :  { %v762_v49 = vadd.f32 %v761_v43, %v698_v38  ;;  %v644_v38 = vsub.f32 %v1248_v20, %v580_v29  ;;  %v647_v20 = vsub.f32 %v1266_v56, %v583_v47  ;;  %v589_v56 = vld [vmem:[#allocation8 + $0x108] sm:$0xff] }
 0x122   :  { %v593_v47 = vld [vmem:[#allocation8 + $0x128] sm:$0xff] }
 0x123   :  { %v708_v12 = vmul.f32 %v644_v38, %v644_v38 }
 0x124   :  { %v433_v40 = vpop.f32.mrf.mxu0  ;;  %v473_v2 = vpop.f32.mrf.mxu1 }
 0x125   :  { %v635_v45 = vsub.f32 %v433_v40, %v571_v24  ;;  %v581_v24 = vld [vmem:[#allocation8 + $0xc8] sm:$0xff]  ;;  %v582_v40 = vld [vmem:[#allocation8 + $0xd0] sm:$0xff]  ;;  %v1293_v51 = vpop.f32.mrf.mxu3 }
 0x126   :  { %v645_v43 = vsub.f32 %v1254_v25, %v581_v24  ;;  %v586_v25 = vld [vmem:[#allocation8 + $0xf0] sm:$0xff] }
 0x127   :  { %v699_v50 = vmul.f32 %v635_v45, %v635_v45 }
 0x129   :  { %v763_v55 = vadd.f32 %v762_v49, %v699_v50  ;;  %v646_v49 = vsub.f32 %v1260_v33, %v582_v40 }
 0x12b   :  { %v764_v61 = vadd.f32 %v763_v55, %v700_v53  ;;  %v709_v53 = vmul.f32 %v645_v43, %v645_v43  ;;  %v585_v55 = vld [vmem:[#allocation8 + $0xe8] sm:$0xff]  ;;  %v710_v57 = vmul.f32 %v646_v49, %v646_v49 }
 0x12d   :  { %v765_v3 = vadd.f32 %v764_v61, %v701_v58  ;;  %v648_v58 = vsub.f32 %v466_v34, %v584_v16  ;;  %v711_v61 = vmul.f32 %v647_v20, %v647_v20  ;;  %v652_v34 = vsub.f32 %v1226_v63, %v588_v11  ;;  %v594_v16 = vld [vmem:[#allocation8 + $0x130] sm:$0xff]  ;;  %v599_v11 = vld [vmem:[#allocation8 + $0x158] sm:$0xff] }
 0x12e   :  { %v657_v20 = vsub.f32 %v1250_v22, %v593_v47 }
 0x12f   :  { %v766_v15 = vadd.f32 %v765_v3, %v702_v1  ;;  %v649_v1 = vsub.f32 %v468_v0, %v585_v55  ;;  %v587_v3 = vld [vmem:[#allocation8 + $0xf8] sm:$0xff]  ;;  %v712_v4 = vmul.f32 %v648_v58, %v648_v58  ;;  %v653_v0 = vsub.f32 %v1230_v7, %v589_v56 }
 0x130   :  { %v651_v60 = vsub.f32 %v473_v2, %v587_v3  ;;  %v716_v38 = vmul.f32 %v652_v34, %v652_v34  ;;  %v598_v3 = vld [vmem:[#allocation8 + $0x150] sm:$0xff]  ;;  %v663_v34 = vsub.f32 %v1290_v48, %v599_v11  ;;  %v605_v48 = vld [vmem:[#allocation8 + $0x188] sm:$0xff]  ;;  %v612_v11 = vld [vmem:[#allocation8 + $0x1c0] sm:$0xff] }
 0x131   :  { %v767_v28 = vadd.f32 %v766_v15, %v703_v8  ;;  %v650_v8 = vsub.f32 %v471_v9, %v586_v25  ;;  %v506_v15 = vpop.f32.mrf.mxu2  ;;  %v592_v9 = vld [vmem:[#allocation8 + $0x120] sm:$0xff] }
 0x132   :  { %v715_v24 = vmul.f32 %v651_v60, %v651_v60  ;;  %v656_v49 = vsub.f32 %v1244_v17, %v592_v9 }
 0x133   :  { %v768_v5 = vadd.f32 %v767_v28, %v704_v21  ;;  %v713_v21 = vmul.f32 %v649_v1, %v649_v1  ;;  %v1296_v28 = vpop.f32.mrf.mxu3 }
 0x134   :  { %v720_v55 = vmul.f32 %v656_v49, %v656_v49 }
 0x135   :  { %v769_v39 = vadd.f32 %v768_v5, %v705_v31  ;;  %v714_v31 = vmul.f32 %v650_v8, %v650_v8 }
 0x137   :  { %v770_v45 = vadd.f32 %v769_v39, %v706_v35  ;;  %v591_v35 = vld [vmem:[#allocation8 + $0x118] sm:$0xff]  ;;  %v654_v39 = vsub.f32 %v1234_v10, %v590_v32 }
 0x138   :  { %v655_v43 = vsub.f32 %v1238_v13, %v591_v35  ;;  %v595_v10 = vld [vmem:[#allocation8 + $0x138] sm:$0xff]  ;;  %v596_v13 = vld [vmem:[#allocation8 + $0x140] sm:$0xff] }
 0x139   :  { %v771_v50 = vadd.f32 %v770_v45, %v707_v42  ;;  %v717_v42 = vmul.f32 %v653_v0, %v653_v0  ;;  %v718_v63 = vmul.f32 %v654_v39, %v654_v39  ;;  %v659_v25 = vsub.f32 %v1262_v36, %v595_v10  ;;  %v600_v36 = vld [vmem:[#allocation8 + $0x160] sm:$0xff]  ;;  %v603_v39 = vld [vmem:[#allocation8 + $0x178] sm:$0xff] }
 0x13a   :  { %v660_v1 = vsub.f32 %v1268_v62, %v596_v13  ;;  %v601_v62 = vld [vmem:[#allocation8 + $0x168] sm:$0xff]  ;;  %v664_v0 = vsub.f32 %v506_v15, %v600_v36  ;;  %v606_v15 = vld [vmem:[#allocation8 + $0x190] sm:$0xff] }
 0x13b   :  { %v772_v54 = vadd.f32 %v771_v50, %v708_v12  ;;  %v508_v12 = vpop.f32.mrf.mxu2  ;;  %v1303_v7 = vpop.f32.mrf.mxu3 }
 0x13c   :  { %v665_v35 = vsub.f32 %v508_v12, %v601_v62  ;;  %v728_v9 = vmul.f32 %v664_v0, %v664_v0 }
 0x13d   :  { %v773_v59 = vadd.f32 %v772_v54, %v709_v53  ;;  %v719_v53 = vmul.f32 %v655_v43, %v655_v43 }
 0x13e   :  { %v729_v47 = vmul.f32 %v665_v35, %v665_v35 }
 0x13f   :  { %v774_v37 = vadd.f32 %v773_v59, %v710_v57  ;;  %v658_v57 = vsub.f32 %v1256_v26, %v594_v16  ;;  %v721_v59 = vmul.f32 %v657_v20, %v657_v20  ;;  %v724_v26 = vmul.f32 %v660_v1, %v660_v1 }
 0x141   :  { %v775_v33 = vadd.f32 %v774_v37, %v711_v61  ;;  %v597_v37 = vld [vmem:[#allocation8 + $0x148] sm:$0xff]  ;;  %v722_v17 = vmul.f32 %v658_v57, %v658_v57 }
 0x142   :  { %v661_v22 = vsub.f32 %v1272_v30, %v597_v37 }
 0x143   :  { %v776_v52 = vadd.f32 %v775_v33, %v712_v4  ;;  %v511_v4 = vpop.f32.mrf.mxu2  ;;  %v723_v33 = vmul.f32 %v659_v25, %v659_v25 }
 0x144   :  { %v725_v56 = vmul.f32 %v661_v22, %v661_v22 }
 0x145   :  { %v777_v29 = vadd.f32 %v776_v52, %v713_v21  ;;  %v1310_v52 = vpop.f32.mrf.mxu3  ;;  %v662_v21 = vsub.f32 %v1281_v44, %v598_v3  ;;  %v604_v44 = vld [vmem:[#allocation8 + $0x180] sm:$0xff] }
 0x146   :  { %v668_v49 = vsub.f32 %v1240_v14, %v604_v44 }
 0x147   :  { %v778_v5 = vadd.f32 %v777_v29, %v714_v31  ;;  %v726_v31 = vmul.f32 %v662_v21, %v662_v21 }
 0x148   :  { %v732_v10 = vmul.f32 %v668_v49, %v668_v49 }
 0x149   :  { %v779_v40 = vadd.f32 %v778_v5, %v715_v24  ;;  %v602_v5 = vld [vmem:[#allocation8 + $0x170] sm:$0xff]  ;;  %v727_v24 = vmul.f32 %v663_v34, %v663_v34 }
 0x14a   :  { %v614_v34 = vld [vmem:[#allocation8 + $0x1d0] sm:$0xff] }
 0x14b   :  { %v780_v45 = vadd.f32 %v779_v40, %v716_v38  ;;  %v513_v38 = vpop.f32.mrf.mxu2 }
 0x14d   :  { %v781_v50 = vadd.f32 %v780_v45, %v717_v42  ;;  %v666_v42 = vsub.f32 %v511_v4, %v602_v5  ;;  %v546_v43 = vpop.f32.mrf.mxu3 }
 0x14f   :  { %v782_v54 = vadd.f32 %v781_v50, %v718_v63  ;;  %v667_v63 = vsub.f32 %v513_v38, %v603_v39  ;;  %v730_v16 = vmul.f32 %v666_v42, %v666_v42  ;;  %v617_v38 = vld [vmem:[#allocation8 + $0x1e8] sm:$0xff] }
 0x151   :  { %v783_v58 = vadd.f32 %v782_v54, %v719_v53  ;;  %v669_v53 = vsub.f32 %v1246_v19, %v605_v48  ;;  %v731_v12 = vmul.f32 %v667_v63, %v667_v63  ;;  %v607_v54 = vld [vmem:[#allocation8 + $0x198] sm:$0xff] }
 0x153   :  { %v784_v61 = vadd.f32 %v783_v58, %v720_v55  ;;  %v670_v55 = vsub.f32 %v1252_v23, %v606_v15  ;;  %v608_v58 = vld [vmem:[#allocation8 + $0x1a0] sm:$0xff]  ;;  %v733_v13 = vmul.f32 %v669_v53, %v669_v53 }
 0x155   :  { %v785_v2 = vadd.f32 %v784_v61, %v721_v59  ;;  %v671_v59 = vsub.f32 %v1258_v27, %v607_v54  ;;  %v609_v61 = vld [vmem:[#allocation8 + $0x1a8] sm:$0xff]  ;;  %v548_v37 = vpop.f32.mrf.mxu3  ;;  %v734_v14 = vmul.f32 %v670_v55, %v670_v55 }
 0x156   :  { %v673_v3 = vsub.f32 %v1270_v6, %v609_v61 }
 0x157   :  { %v786_v8 = vadd.f32 %v785_v2, %v722_v17  ;;  %v672_v17 = vsub.f32 %v1264_v41, %v608_v58  ;;  %v610_v2 = vld [vmem:[#allocation8 + $0x1b0] sm:$0xff]  ;;  %v735_v19 = vmul.f32 %v671_v59, %v671_v59  ;;  %v676_v41 = vsub.f32 %v1293_v51, %v612_v11 }
 0x158   :  { %v674_v23 = vsub.f32 %v1275_v46, %v610_v2  ;;  %v678_v46 = vsub.f32 %v1303_v7, %v614_v34 }
 0x159   :  { %v787_v60 = vadd.f32 %v786_v8, %v723_v33  ;;  %v611_v33 = vld [vmem:[#allocation8 + $0x1b8] sm:$0xff]  ;;  %v736_v22 = vmul.f32 %v672_v17, %v672_v17  ;;  %v740_v0 = vmul.f32 %v676_v41, %v676_v41 }
 0x15a   :  { %v675_v27 = vsub.f32 %v1284_v18, %v611_v33  ;;  %v738_v36 = vmul.f32 %v674_v23, %v674_v23  ;;  %v742_v39 = vmul.f32 %v678_v46, %v678_v46 }
 0x15b   :  { %v788_v29 = vadd.f32 %v787_v60, %v724_v26  ;;  %v737_v26 = vmul.f32 %v673_v3, %v673_v3  ;;  %v613_v60 = vld [vmem:[#allocation8 + $0x1c8] sm:$0xff] }
 0x15c   :  { %v739_v62 = vmul.f32 %v675_v27, %v675_v27  ;;  %v677_v6 = vsub.f32 %v1296_v28, %v613_v60 }
 0x15d   :  { %v789_v32 = vadd.f32 %v788_v29, %v725_v56  ;;  %v551_v29 = vpop.f32.mrf.mxu3 }
 0x15f   :  { %v790_v30 = vadd.f32 %v789_v32, %v726_v31  ;;  %v615_v32 = vld [vmem:[#allocation8 + $0x1d8] sm:$0xff] }
 0x160   :  { %v679_v18 = vsub.f32 %v1310_v52, %v615_v32 }
 0x161   :  { %v791_v40 = vadd.f32 %v790_v30, %v727_v24  ;;  %v616_v24 = vld [vmem:[#allocation8 + $0x1e0] sm:$0xff]  ;;  %v741_v30 = vmul.f32 %v677_v6, %v677_v6 }
 0x162   :  { %v743_v42 = vmul.f32 %v679_v18, %v679_v18 }
 0x163   :  { %v792_v45 = vadd.f32 %v791_v40, %v728_v9  ;;  %v680_v40 = vsub.f32 %v546_v43, %v616_v24  ;;  %v618_v9 = vld [vmem:[#allocation8 + $0x1f0] sm:$0xff] }
 0x164   :  { %v682_v49 = vsub.f32 %v551_v29, %v618_v9 }
 0x165   :  { %v793_v50 = vadd.f32 %v792_v45, %v729_v47  ;;  %v681_v45 = vsub.f32 %v548_v37, %v617_v38  ;;  %v553_v28 = vpop.f32.mrf.mxu3  ;;  %v619_v47 = vld [vmem:[#allocation8 + $0x1f8] sm:$0xff]  ;;  %v744_v48 = vmul.f32 %v680_v40, %v680_v40 }
 0x166   :  { %v746_v53 = vmul.f32 %v682_v49, %v682_v49 }
 0x167   :  { %v794_v20 = vadd.f32 %v793_v50, %v730_v16  ;;  %v745_v50 = vmul.f32 %v681_v45, %v681_v45  ;;  %v683_v16 = vsub.f32 %v553_v28, %v619_v47 }
 0x169   :  { %v795_v57 = vadd.f32 %v794_v20, %v731_v12  ;;  %v747_v52 = vmul.f32 %v683_v16, %v683_v16 }
 0x16b   :  { %v796_v25 = vadd.f32 %v795_v57, %v732_v10 }
 0x16d   :  { %v797_v1 = vadd.f32 %v796_v25, %v733_v13 }
 0x16f   :  { %v798_v4 = vadd.f32 %v797_v1, %v734_v14 }
 0x171   :  { %v799_v8 = vadd.f32 %v798_v4, %v735_v19 }
 0x173   :  { %v800_v21 = vadd.f32 %v799_v8, %v736_v22 }
 0x175   :  { %v801_v56 = vadd.f32 %v800_v21, %v737_v26 }
 0x177   :  { %v802_v31 = vadd.f32 %v801_v56, %v738_v36 }
 0x179   :  { %v803_v5 = vadd.f32 %v802_v31, %v739_v62 }
 0x17b   :  { %v804_v35 = vadd.f32 %v803_v5, %v740_v0 }
 0x17d   :  { %v805_v51 = vadd.f32 %v804_v35, %v741_v30 }
 0x17f   :  { %v806_v44 = vadd.f32 %v805_v51, %v742_v39 }
 0x181   :  { %v807_v63 = vadd.f32 %v806_v44, %v743_v42 }
 0x183   :  { %v808_v7 = vadd.f32 %v807_v63, %v744_v48 }
 0x185   :  { %v809_v15 = vadd.f32 %v808_v7, %v745_v50 }
 0x187   :  { %v810_v20 = vadd.f32 %v809_v15, %v746_v53 }
 0x189   :  { %v811_v12 = vadd.f32 %v810_v20, %v747_v52 }
 0x18b   :  { %818 = vadd.xlane.f32.xlu0 %v811_v12 }
 0x1fe   :  { %v819_v54 = vpop.xlane.xlu0 %818 }
 0x1ff   :  { %v820_v43 = vrot.slane %v819_v54, 4 }
 0x201   :  { %v821_v10 = vadd.f32 %v820_v43, %v819_v54 }
 0x203   :  { %v822_v55 = vrot.slane %v821_v10, 2 }
 0x205   :  { %v823_v57 = vadd.f32 %v822_v55, %v821_v10 }
 0x207   :  { %v824_v58 = vrot.slane %v823_v57, 1 }
 0x209   :  { %v825_v13 = vadd.f32 %v824_v58, %v823_v57 }
 0x20b   :  { %v826_v59 = vmul.f32 1.5258789e-05, %v825_v13 }
 0x20d   :  { %828 = vst.msk [vmem:[#allocation9] sm:$0x1] %vm827_vm0, %v826_v59 }
 0x20e   :  { %839 = dma.vmem_to_hbm [thread:$0]  %s835_s2, 16, %s837_s5, [#allocation5]  }
 0x20f   :  { %1179 = dma.done.wait [#allocation5], 16  }
 0x210   :  { %1180 = vsyncadd [#allocation5], 4294967280 }
 0x211   :  { %844 = vsyncpa [#allocation4], 1 }
 0x212   :  { %845 = vsyncpa [#allocation7], 1 }
 0x213   :  { %846 = vsyncpa [#allocation5], 1 }

</bundles_post_ra>
